<compile_context>
chip_gen: v5e
topology: v5e:2x2
jax: 0.10.0
libtpu: 0.0.40
codegen_flags: <defaults>
</compile_context>

<pallas_src>
import jax
import jax.numpy as jnp
from jax.experimental import pallas as pl
from jax.experimental.pallas import tpu as pltpu


def gvq_kernel(scalars_ref,                    # SMEM: [w = 0.5*precision_q, 1/temperature]
               z_ref, cb_ref, csq_ref, g_ref,  # VMEM: z rows (f32), codebook (bf16),
                                               #       ||c||^2 (f32), gumbel noise (f32)
               zq_ref, probsum_ref, kldp_ref, sqep_ref):
    w = scalars_ref[0]          # 0.5 * precision_q (gaussian_1: scalar weight)
    inv_temp = scalars_ref[1]   # 1 / temperature

    z = z_ref[...]              # (tm, d) f32
    cb = cb_ref[...]            # (K, d)  bf16, resident across the grid
    tm, d = z.shape
    K = cb.shape[0]

    # logits up to a per-row constant:  -w * (||c||^2 - 2 z c^T)
    # (the -w*||z||^2 term is a per-row constant and cancels in every softmax)
    zc = jax.lax.dot_general(z.astype(jnp.bfloat16), cb,
                             (((1,), (1,)), ((), ())),
                             preferred_element_type=jnp.float32)      # (tm, K)
    logit = -w * (csq_ref[...] - 2.0 * zc)

    # softmax / log_softmax over the codebook axis (divides -> EUP reciprocal)
    m = jnp.max(logit, axis=-1, keepdims=True)
    e = jnp.exp(logit - m)
    s = jnp.sum(e, axis=-1, keepdims=True)
    probs = e * pl.reciprocal(s, approx=True)
    logp = (logit - m) - jnp.log(s)

    # gumbel-softmax sample: softmax((logit + g) / temperature)
    y = (logit + g_ref[...]) * inv_temp
    my = jnp.max(y, axis=-1, keepdims=True)
    ey = jnp.exp(y - my)
    sy = jnp.sum(ey, axis=-1, keepdims=True)
    enc = ey * pl.reciprocal(sy, approx=True)                          # (tm, K)

    # quantized vectors: encodings @ codebook  (MXU, bf16 operands / f32 acc)
    zq = jnp.dot(enc.astype(jnp.bfloat16), cb,
                 preferred_element_type=jnp.float32)                   # (tm, d)
    zq_ref[...] = zq.astype(zq_ref.dtype)

    # per-block partial reductions, pre-collapsed to 8 sublanes on the VPU only.
    # (tm, X) -> (tm//8, 8, X) keeps (8,128) tiles intact (layout-preserving).
    probsum_ref[0] = jnp.sum(probs.reshape(tm // 8, 8, K), axis=0)           # (8, K)
    kldp_ref[0] = jnp.sum((probs * logp).reshape(tm // 8, 8, K), axis=0)     # (8, K)
    sqep_ref[0] = jnp.sum(((z - zq) ** 2).reshape(tm // 8, 8, d), axis=0)    # (8, d)


def gaussian_vq_forward(z_from_encoder, var_q, codebook, temperature,
                        key=None, tm=1024):
    bs, seq_len, D = z_from_encoder.shape
    K, d = codebook.shape
    assert D % d == 0
    n = bs * seq_len * (D // d)

    # Clamp tile to problem size; keep grid >= 2 when possible so the
    # 'parallel' row axis feeds both TensorCores on v7x.
    tm = min(tm, n)
    if n // tm < 2 and n % 2 == 0 and (n // 2) % 8 == 0:
        tm = n // 2
    assert n % tm == 0 and tm % 8 == 0
    grid = n // tm

    z_flat = z_from_encoder.reshape(n, d).astype(jnp.float32)
    cb_f32 = codebook.astype(jnp.float32)
    cb_bf16 = cb_f32.astype(jnp.bfloat16)                   # MXU operand
    csq = jnp.sum(cb_f32 * cb_f32, axis=1)[None, :]         # (1, K), f32, hoisted

    precision_q = 1.0 / jnp.maximum(var_q, 1e-10)           # torch.clamp(var_q, min=1e-10)
    weight = (0.5 * precision_q).astype(jnp.float32)        # scalar for gaussian_1
    scalars = jnp.stack([weight, jnp.float32(1.0 / temperature)])

    # gumbel noise (matches torch: -log(-log(U + eps) + eps)), generated once
    # in the wrapper so the kernel has no Mosaic-only PRNG primitives.
    if key is None:
        key = jax.random.PRNGKey(0)
    eps = 1e-10
    u = jax.random.uniform(key, (n, K), dtype=jnp.float32)
    gumbel = -jnp.log(-jnp.log(u + eps) + eps)

    zq, probsum, kldp, sqep = pl.pallas_call(
        gvq_kernel,
        out_shape=(
            jax.ShapeDtypeStruct((n, d), jnp.float32),        # z_quantized
            jax.ShapeDtypeStruct((grid, 8, K), jnp.float32),  # partial sum of probs
            jax.ShapeDtypeStruct((grid, 8, K), jnp.float32),  # partial sum of p*log p
            jax.ShapeDtypeStruct((grid, 8, d), jnp.float32),  # partial sum of (z - zq)^2
        ),
        grid_spec=pltpu.PrefetchScalarGridSpec(
            num_scalar_prefetch=0,
            grid=(grid,),
            in_specs=[
                pl.BlockSpec(memory_space=pltpu.MemorySpace.SMEM),   # [w, 1/temp]
                pl.BlockSpec((tm, d), lambda i: (i, 0)),             # z rows
                pl.BlockSpec((K, d), lambda i: (0, 0)),              # full codebook (bf16)
                pl.BlockSpec((1, K), lambda i: (0, 0)),              # ||c||^2
                pl.BlockSpec((tm, K), lambda i: (i, 0)),             # gumbel noise rows
            ],
            out_specs=(
                pl.BlockSpec((tm, d), lambda i: (i, 0)),
                pl.BlockSpec((1, 8, K), lambda i: (i, 0, 0)),
                pl.BlockSpec((1, 8, K), lambda i: (i, 0, 0)),
                pl.BlockSpec((1, 8, d), lambda i: (i, 0, 0)),
            ),
        ),
        compiler_params=pltpu.CompilerParams(
            dimension_semantics=("parallel",),
            vmem_limit_bytes=32 * 1024 * 1024,
        ),
    )(scalars, z_flat, cb_bf16, csq, gumbel)

    # cheap scalar glue (matches the PyTorch reductions exactly)
    z_to_decoder = zq.reshape(bs, seq_len, D)
    avg_probs = jnp.sum(probsum, axis=(0, 1)) / n                 # mean over flat rows
    kld_discrete = jnp.sum(kldp) / bs
    # gaussian_1: weight is scalar, so mean_b sum_{s,d} (z - zq)^2 * w == w * total / bs
    kld_continuous = weight * jnp.sum(sqep) / bs
    loss = kld_discrete + kld_continuous
    perplexity = jnp.exp(-jnp.sum(avg_probs * jnp.log(avg_probs + 1e-7)))
    return z_to_decoder, loss, perplexity


if __name__ == "__main__":
    key = jax.random.PRNGKey(0)
    bs, seq_len = 2, 64
    dim_dict, size_dict = 32, 128
    D = dim_dict                 # one codebook group per position
    temperature = 0.5

    k1, k2, k3 = jax.random.split(key, 3)
    z = jax.random.normal(k1, (bs, seq_len, D), dtype=jnp.float32)
    codebook = 0.1 * jax.random.normal(k2, (size_dict, dim_dict), dtype=jnp.float32)
    var_q = jnp.float32(1.0)

    z_dec, loss, perplexity = gaussian_vq_forward(
        z, var_q, codebook, temperature, key=k3)
    jax.block_until_ready((z_dec, loss, perplexity))

    assert z_dec.shape == (bs, seq_len, D)
    assert bool(jnp.isfinite(loss)) and bool(jnp.isfinite(perplexity))
    assert bool(jnp.all(jnp.isfinite(z_dec)))

    # cross-check the gumbel-independent statistics against a pure-JAX reference
    zf = z.reshape(-1, dim_dict)
    d2 = (jnp.sum(zf * zf, 1, keepdims=True)
          + jnp.sum(codebook * codebook, 1)[None, :]
          - 2.0 * zf @ codebook.T)
    p_ref = jax.nn.softmax(-0.5 / jnp.maximum(var_q, 1e-10) * d2, axis=-1)
    avg_ref = jnp.mean(p_ref, axis=0)
    perp_ref = jnp.exp(-jnp.sum(avg_ref * jnp.log(avg_ref + 1e-7)))
    assert jnp.allclose(perplexity, perp_ref, rtol=5e-2), (perplexity, perp_ref)

    print("KERNEL_OK")
</pallas_src>

<mosaic_0001>
module attributes {stable_mosaic.version = 11 : i64} {
  func.func @gvq_kernel(%arg0: i32, %arg1: memref<2xf32, #tpu.memory_space<smem>>, %arg2: memref<64x32xf32, #tpu.memory_space<vmem>>, %arg3: memref<128x32xbf16, #tpu.memory_space<vmem>>, %arg4: memref<1x128xf32, #tpu.memory_space<vmem>>, %arg5: memref<64x128xf32, #tpu.memory_space<vmem>>, %arg6: memref<64x32xf32, #tpu.memory_space<vmem>>, %arg7: memref<1x8x128xf32, #tpu.memory_space<vmem>>, %arg8: memref<1x8x128xf32, #tpu.memory_space<vmem>>, %arg9: memref<1x8x32xf32, #tpu.memory_space<vmem>>) attributes {dimension_semantics = [#tpu.dimension_semantics<parallel>], iteration_bounds = array<i64: 2>, scalar_prefetch = 0 : i64, scratch_operands = 0 : i64, tpu.core_type = #tpu.core_type<tc>, window_params = [{transform_indices = @transform_0, window_bounds = array<i64: 2>}, {transform_indices = @transform_1, window_bounds = array<i64: 64, 32>}, {pipeline_mode = #tpu.pipeline_mode<synchronous>, transform_indices = @transform_2, window_bounds = array<i64: 128, 32>}, {pipeline_mode = #tpu.pipeline_mode<synchronous>, transform_indices = @transform_3, window_bounds = array<i64: 1, 128>}, {transform_indices = @transform_4, window_bounds = array<i64: 64, 128>}, {transform_indices = @transform_5, window_bounds = array<i64: 64, 32>}, {transform_indices = @transform_6, window_bounds = array<i64: 1, 8, 128>}, {transform_indices = @transform_7, window_bounds = array<i64: 1, 8, 128>}, {transform_indices = @transform_8, window_bounds = array<i64: 1, 8, 32>}]} {
    %c0 = arith.constant 0 : index
    %0 = memref.load %arg1[%c0] : memref<2xf32, #tpu.memory_space<smem>>
    %c1 = arith.constant 1 : index
    %1 = memref.load %arg1[%c1] : memref<2xf32, #tpu.memory_space<smem>>
    %c0_0 = arith.constant 0 : index
    %c0_1 = arith.constant 0 : index
    %2 = vector.load %arg2[%c0_0, %c0_1] : memref<64x32xf32, #tpu.memory_space<vmem>>, vector<64x32xf32>
    %c0_2 = arith.constant 0 : index
    %c0_3 = arith.constant 0 : index
    %3 = vector.load %arg3[%c0_2, %c0_3] : memref<128x32xbf16, #tpu.memory_space<vmem>>, vector<128x32xbf16>
    %4 = arith.truncf %2 : vector<64x32xf32> to vector<64x32xbf16>
    %cst = arith.constant dense<0.000000e+00> : vector<64x128xf32>
    %5 = tpu.matmul %4, %3, %cst {dimension_numbers = #tpu.dot_dimension_numbers<[1], [1], [0], [0], [0, 0, 1, 0], [], []>} : vector<64x32xbf16>, vector<128x32xbf16>, vector<64x128xf32> -> vector<64x128xf32>
    %cst_4 = arith.constant 0.000000e+00 : f32
    %6 = arith.subf %cst_4, %0 : f32
    %c0_5 = arith.constant 0 : index
    %c0_6 = arith.constant 0 : index
    %7 = vector.load %arg4[%c0_5, %c0_6] : memref<1x128xf32, #tpu.memory_space<vmem>>, vector<1x128xf32>
    %cst_7 = arith.constant 2.000000e+00 : f32
    %8 = vector.broadcast %cst_7 : f32 to vector<64x128xf32>
    %9 = arith.mulf %8, %5 : vector<64x128xf32>
    %10 = vector.broadcast %7 : vector<1x128xf32> to vector<64x128xf32>
    %11 = arith.subf %10, %9 : vector<64x128xf32>
    %12 = vector.broadcast %6 : f32 to vector<64x128xf32>
    %13 = arith.mulf %12, %11 : vector<64x128xf32>
    %cst_8 = arith.constant dense<0xFF800000> : vector<64xf32>
    %14 = vector.multi_reduction <maximumf>, %13, %cst_8 [1] : vector<64x128xf32> to vector<64xf32>
    %15 = vector.shape_cast %14 : vector<64xf32> to vector<64x1xf32>
    %16 = vector.broadcast %15 : vector<64x1xf32> to vector<64x128xf32>
    %17 = arith.subf %13, %16 : vector<64x128xf32>
    %18 = math.exp %17 : vector<64x128xf32>
    %cst_9 = arith.constant dense<0.000000e+00> : vector<64xf32>
    %19 = vector.multi_reduction <add>, %18, %cst_9 [1] : vector<64x128xf32> to vector<64xf32>
    %20 = vector.shape_cast %19 : vector<64xf32> to vector<64x1xf32>
    %21 = tpu.reciprocal %20 {approx = true} : vector<64x1xf32> -> vector<64x1xf32>
    %22 = vector.broadcast %21 : vector<64x1xf32> to vector<64x128xf32>
    %23 = arith.mulf %18, %22 : vector<64x128xf32>
    %24 = vector.broadcast %15 : vector<64x1xf32> to vector<64x128xf32>
    %25 = arith.subf %13, %24 : vector<64x128xf32>
    %26 = math.log %20 : vector<64x1xf32>
    %27 = vector.broadcast %26 : vector<64x1xf32> to vector<64x128xf32>
    %28 = arith.subf %25, %27 : vector<64x128xf32>
    %c0_10 = arith.constant 0 : index
    %c0_11 = arith.constant 0 : index
    %29 = vector.load %arg5[%c0_10, %c0_11] : memref<64x128xf32, #tpu.memory_space<vmem>>, vector<64x128xf32>
    %30 = arith.addf %13, %29 : vector<64x128xf32>
    %31 = vector.broadcast %1 : f32 to vector<64x128xf32>
    %32 = arith.mulf %30, %31 : vector<64x128xf32>
    %cst_12 = arith.constant dense<0xFF800000> : vector<64xf32>
    %33 = vector.multi_reduction <maximumf>, %32, %cst_12 [1] : vector<64x128xf32> to vector<64xf32>
    %34 = vector.shape_cast %33 : vector<64xf32> to vector<64x1xf32>
    %35 = vector.broadcast %34 : vector<64x1xf32> to vector<64x128xf32>
    %36 = arith.subf %32, %35 : vector<64x128xf32>
    %37 = math.exp %36 : vector<64x128xf32>
    %cst_13 = arith.constant dense<0.000000e+00> : vector<64xf32>
    %38 = vector.multi_reduction <add>, %37, %cst_13 [1] : vector<64x128xf32> to vector<64xf32>
    %39 = vector.shape_cast %38 : vector<64xf32> to vector<64x1xf32>
    %40 = tpu.reciprocal %39 {approx = true} : vector<64x1xf32> -> vector<64x1xf32>
    %41 = vector.broadcast %40 : vector<64x1xf32> to vector<64x128xf32>
    %42 = arith.mulf %37, %41 : vector<64x128xf32>
    %43 = arith.truncf %42 : vector<64x128xf32> to vector<64x128xbf16>
    %cst_14 = arith.constant dense<0.000000e+00> : vector<64x32xf32>
    %44 = tpu.matmul %43, %3, %cst_14 {dimension_numbers = #tpu.dot_dimension_numbers<[1], [0], [0], [1], [0, 0, 1, 1], [], []>} : vector<64x128xbf16>, vector<128x32xbf16>, vector<64x32xf32> -> vector<64x32xf32>
    %c0_15 = arith.constant 0 : index
    %c0_16 = arith.constant 0 : index
    %45 = vector.load %arg6[%c0_15, %c0_16] : memref<64x32xf32, #tpu.memory_space<vmem>>, vector<64x32xf32>
    tpu.vector_store %arg6[%c0_15, %c0_16], %44 {strides = array<i32>} : memref<64x32xf32, #tpu.memory_space<vmem>>, vector<64x32xf32>,
    %46 = vector.shape_cast %23 : vector<64x128xf32> to vector<8x8x128xf32>
    %cst_17 = arith.constant dense<0.000000e+00> : vector<8x128xf32>
    %47 = vector.multi_reduction <add>, %46, %cst_17 [0] : vector<8x8x128xf32> to vector<8x128xf32>
    %c0_18 = arith.constant 0 : index
    %c0_19 = arith.constant 0 : index
    %c0_20 = arith.constant 0 : index
    %48 = vector.load %arg7[%c0_18, %c0_19, %c0_20] : memref<1x8x128xf32, #tpu.memory_space<vmem>>, vector<1x8x128xf32>
    %49 = vector.shape_cast %48 : vector<1x8x128xf32> to vector<8x128xf32>
    %50 = vector.shape_cast %47 : vector<8x128xf32> to vector<1x8x128xf32>
    tpu.vector_store %arg7[%c0_18, %c0_19, %c0_20], %50 {strides = array<i32>} : memref<1x8x128xf32, #tpu.memory_space<vmem>>, vector<1x8x128xf32>,
    %51 = arith.mulf %23, %28 : vector<64x128xf32>
    %52 = vector.shape_cast %51 : vector<64x128xf32> to vector<8x8x128xf32>
    %cst_21 = arith.constant dense<0.000000e+00> : vector<8x128xf32>
    %53 = vector.multi_reduction <add>, %52, %cst_21 [0] : vector<8x8x128xf32> to vector<8x128xf32>
    %c0_22 = arith.constant 0 : index
    %c0_23 = arith.constant 0 : index
    %c0_24 = arith.constant 0 : index
    %54 = vector.load %arg8[%c0_22, %c0_23, %c0_24] : memref<1x8x128xf32, #tpu.memory_space<vmem>>, vector<1x8x128xf32>
    %55 = vector.shape_cast %54 : vector<1x8x128xf32> to vector<8x128xf32>
    %56 = vector.shape_cast %53 : vector<8x128xf32> to vector<1x8x128xf32>
    tpu.vector_store %arg8[%c0_22, %c0_23, %c0_24], %56 {strides = array<i32>} : memref<1x8x128xf32, #tpu.memory_space<vmem>>, vector<1x8x128xf32>,
    %57 = arith.subf %2, %44 : vector<64x32xf32>
    %58 = arith.mulf %57, %57 : vector<64x32xf32>
    %59 = vector.shape_cast %58 : vector<64x32xf32> to vector<8x8x32xf32>
    %cst_25 = arith.constant dense<0.000000e+00> : vector<8x32xf32>
    %60 = vector.multi_reduction <add>, %59, %cst_25 [0] : vector<8x8x32xf32> to vector<8x32xf32>
    %c0_26 = arith.constant 0 : index
    %c0_27 = arith.constant 0 : index
    %c0_28 = arith.constant 0 : index
    %61 = vector.load %arg9[%c0_26, %c0_27, %c0_28] : memref<1x8x32xf32, #tpu.memory_space<vmem>>, vector<1x8x32xf32>
    %62 = vector.shape_cast %61 : vector<1x8x32xf32> to vector<8x32xf32>
    %63 = vector.shape_cast %60 : vector<8x32xf32> to vector<1x8x32xf32>
    tpu.vector_store %arg9[%c0_26, %c0_27, %c0_28], %63 {strides = array<i32>} : memref<1x8x32xf32, #tpu.memory_space<vmem>>, vector<1x8x32xf32>,
    return
  }
  func.func @transform_0(%arg0: i32) -> i32 {
    %c0_i32 = arith.constant 0 : i32
    %c0_i32_0 = arith.constant 0 : i32
    return %c0_i32 : i32
  }
  func.func @transform_1(%arg0: i32) -> (i32, i32) {
    %c0_i32 = arith.constant 0 : i32
    %c0_i32_0 = arith.constant 0 : i32
    return %arg0, %c0_i32 : i32, i32
  }
  func.func @transform_2(%arg0: i32) -> (i32, i32) {
    %c0_i32 = arith.constant 0 : i32
    %c0_i32_0 = arith.constant 0 : i32
    %c0_i32_1 = arith.constant 0 : i32
    return %c0_i32, %c0_i32_0 : i32, i32
  }
  func.func @transform_3(%arg0: i32) -> (i32, i32) {
    %c0_i32 = arith.constant 0 : i32
    %c0_i32_0 = arith.constant 0 : i32
    %c0_i32_1 = arith.constant 0 : i32
    return %c0_i32, %c0_i32_0 : i32, i32
  }
  func.func @transform_4(%arg0: i32) -> (i32, i32) {
    %c0_i32 = arith.constant 0 : i32
    %c0_i32_0 = arith.constant 0 : i32
    return %arg0, %c0_i32 : i32, i32
  }
  func.func @transform_5(%arg0: i32) -> (i32, i32) {
    %c0_i32 = arith.constant 0 : i32
    %c0_i32_0 = arith.constant 0 : i32
    return %arg0, %c0_i32 : i32, i32
  }
  func.func @transform_6(%arg0: i32) -> (i32, i32, i32) {
    %c0_i32 = arith.constant 0 : i32
    %c0_i32_0 = arith.constant 0 : i32
    %c0_i32_1 = arith.constant 0 : i32
    return %arg0, %c0_i32, %c0_i32_0 : i32, i32, i32
  }
  func.func @transform_7(%arg0: i32) -> (i32, i32, i32) {
    %c0_i32 = arith.constant 0 : i32
    %c0_i32_0 = arith.constant 0 : i32
    %c0_i32_1 = arith.constant 0 : i32
    return %arg0, %c0_i32, %c0_i32_0 : i32, i32, i32
  }
  func.func @transform_8(%arg0: i32) -> (i32, i32, i32) {
    %c0_i32 = arith.constant 0 : i32
    %c0_i32_0 = arith.constant 0 : i32
    %c0_i32_1 = arith.constant 0 : i32
    return %arg0, %c0_i32, %c0_i32_0 : i32, i32, i32
  }
}

</mosaic_0001>

<bundles_post_ra>
// kernel: tpu_custom_call.1
= control target key start
LH: loop header
LB: loop body
LE: loop exit
PB: predicated region body
PF: predicated region fallthrough
CT: control target
= control target key end

     0   :  { %s1916_s0 = inlined_call_operand.vmem [shape: f32[2], index: 0, kind: input, shape index: {}]   ;;  %s1917_s1 = inlined_call_operand.vmem [shape: f32[128,32], index: 1, kind: input, shape index: {}]   ;;  %s1918_s2 = inlined_call_operand.vmem [shape: bf16[128,32], index: 2, kind: input, shape index: {}]   ;;  %s1919_s3 = inlined_call_operand.vmem [shape: f32[1,128], index: 3, kind: input, shape index: {}]   ;;  %s1920_s4 = inlined_call_operand.vmem [shape: f32[128,128], index: 4, kind: input, shape index: {}]   ;;  %s1921_s5 = inlined_call_operand.vmem [shape: f32[128,32], index: 5, kind: output, shape index: {0}]   ;;  %s1922_s6 = inlined_call_operand.hbm [shape: f32[2,8,128], index: 6, kind: output, shape index: {1}]   ;;  %s1923_s7 = inlined_call_operand.hbm [shape: f32[2,8,128], index: 7, kind: output, shape index: {2}]   ;;  %s1924_s8 = inlined_call_operand.hbm [shape: f32[2,8,32], index: 8, kind: output, shape index: {3}]  }
   0x1   :  { %1928 = sst [smem:[#allocation13_spill]] %s1916_s0 }
   0x2   :  { %1929 = sst [smem:[#allocation14_spill]] %s1917_s1 }
   0x3   :  { %1930 = sst [smem:[#allocation15_spill]] %s1918_s2 }
   0x4   :  { %14 = vsyncpa [#allocation4], 0 }
   0x5   :  { %15 = vsyncpa [#allocation3], 0 }
   0x6   :  { %17 = vsyncpa [#allocation3 + $0x1], 0 }
   0x7   :  { %18 = vsyncpa [#allocation7], 0 }
   0x8   :  { %20 = vsyncpa [#allocation7 + $0x1], 0  ;;  %s1485_s27 = smov 0   ;;  %s1487_s28 = smov 0  }
   0x9   :  { %s1489_s29 = smov 0   ;;  %s1491_s30 = smov 0  }
   0xa LB: > { %s1506_s9 = sadd.s32 4294967295, %s1437_s30   ;;  %s1925_s10 = sadd.s32 4294967294, %s1437_s30   ;;  %s1437_s30 = sphi %s1491_s30, %s1945_s30   ;;  %s1433_s29 = sphi %s1489_s29, %s1944_s29   ;;  %s1429_s28 = sphi %s1487_s28, %s1943_s28   ;;  %s1425_s27 = sphi %s1485_s27, %s1942_s27  }
   0xb   : > { %s1510_s11 = sadd.s32 1, %s1437_s30   ;;  %s174_s12 = sadd.s32 1, %s1433_s29 }
   0xc   : > { %s171_s13 = ssub.s32 %s1437_s30, %s1510_s11  ;;  %p184_p0 = scmp.ne.s32.totalorder %s1433_s29, %s1429_s28 }
   0xd   : > { %p172_p1 = scmp.eq.s32.totalorder %s171_s13, 0  ;;  %p185_p2 = scmp.eq.s32.totalorder %s1506_s9, 1 }
   0xe   : > { %p190_p3 = scmp.ne.s32.totalorder %s1429_s28, %s1425_s27  ;;  %p191_p4 = scmp.eq.s32.totalorder %s1925_s10, 1 }
   0xf   : > { %s1523_s14 = scalar_select %p172_p1, %s1433_s29, %s174_s12  }
  0x10   : > { %p1525_p5 = por %p185_p2, %p184_p0  ;;  %p1529_p6 = por %p191_p4, %p190_p3 }
  0x11   : > { %p1072_p7 = scmp.ge.s32.totalorder %s1437_s30, 1  ;;  %p250_p8 = scmp.lt.s32.totalorder %s1437_s30, 3 }
  0x12   : > { %p1179_p9 = scmp.eq.s32.totalorder %s1506_s9, 0  ;;  %s1933_s0 = sld [smem:[#allocation13_spill]] }
  0x13   : > { %p251_p10 = pnand %p1072_p7, %p250_p8  ;;  %s1439_s20 = smov [#allocation2]  }
  0x15   : > { %p1165_p11 = pneg %p251_p10  ;;  %299 = sbr.rel (%p251_p10) target bundleno = 711 (0x2c7), region = 40 }
  0x17   : > { %p1166_p12 = pnand %p1179_p9, %p1165_p11 }
  0x18   : > { %s262_s19 = sshll.u32 %s1933_s0, 4  ;;  %s263_s19 = int_to_ptr.vmem [resolvable:$true] %s262_s19 }
  0x19   : > { %1168 = dma.vmem_to_smem (!%p1166_p12), %s263_s19, 16, %s1439_s20, [#allocation4]  }
  0x1a   : > { %1412 = dma.done.wait (%p1179_p9), [#allocation4], 16  }
  0x1b   : > { %1414 = vsyncadd (%p1179_p9), [#allocation4], 4294967280 }
  0x1c   : > { %306 = sfence }
  0x1d   : > { %s1934_s2 = sld [smem:[#allocation15_spill]]  ;;  %vm443_vm0 = vcmask 261120   ;;  %s1570_s25 = sshll.u32 %s1506_s9, 3  ;;  %v1613_v28 = vld [vmem:[%s1919_s3] ss:$0 sm:$0xff] }
  0x1e   : > { %p356_p13 = scmp.lt.s32.totalorder %s1570_s25, 15  ;;  %s1935_s1 = sld [smem:[#allocation14_spill]] }
  0x1f   : > { %s373_s19 = sld [smem:[#allocation2]]  ;;  %s867_s23 = scalar_lea.hbm %s1922_s6, %s1570_s25 }
  0x20   : > { %s357_s26 = scalar_select %p356_p13, %s1570_s25, 15 }
  0x21   : > { %s1086_s21 = sld [smem:[#allocation2 + $0x1]] }
  0x22   : > { %s1575_s12 = sshll.u32 %s357_s26, 3 }
  0x23   : > { %v1138_v0 = vld [vmem:[%s1934_s2 + $0x38] sm:$0xff]  ;;  %v1137_v2 = vld [vmem:[%s1934_s2 + $0x30] sm:$0xff]  ;;  %v1136_v4 = vld [vmem:[%s1934_s2 + $0x28] sm:$0xff]  ;;  %s1619_s13 = scalar_lea.vmem %s1920_s4, %s1575_s12 }
  0x24   : > { %v478_v1 = vsel %vm443_vm0, %v1138_v0, 0  ;;  %744 = vmatpush.bf16.msra.mxu1 %v1138_v0  ;;  %v475_v3 = vsel %vm443_vm0, %v1137_v2, 0  ;;  %v1135_v5 = vld [vmem:[%s1934_s2 + $0x20] sm:$0xff]  ;;  %v472_v6 = vsel %vm443_vm0, %v1136_v4, 0  ;;  %v1134_v7 = vld [vmem:[%s1934_s2 + $0x18] sm:$0xff]  ;;  %v1133_v8 = vld [vmem:[%s1934_s2 + $0x10] sm:$0xff]  ;;  %s359_s18 = scalar_lea.vmem %s1935_s1, %s1575_s12 }
  0x25   : > { %480 = vmatpush.bf16.xpose.msra.mxu0 %v478_v1  ;;  %1139 = vmatpush.bf16.xpose.msra.mxu2 %v478_v1  ;;  %v469_v9 = vsel %vm443_vm0, %v1135_v5, 0  ;;  %v1132_v10 = vld [vmem:[%s1934_s2 + $0x8] sm:$0xff]  ;;  %v1131_v11 = vld [vmem:[%s1934_s2] sm:$0xff]  ;;  %v466_v12 = vsel %vm443_vm0, %v1134_v7, 0  ;;  %v463_v13 = vsel %vm443_vm0, %v1133_v8, 0  ;;  %v1586_v18 = vld [vmem:[%s359_s18 + $0x10] sm:$0xff] }
  0x26   : > { %1140 = vmatpush.bf16.xpose.msra.mxu3 %v478_v1  ;;  %v460_v14 = vsel %vm443_vm0, %v1132_v10, 0  ;;  %v457_v15 = vsel %vm443_vm0, %v1131_v11, 0  ;;  %v1582_v16 = vld [vmem:[%s359_s18] sm:$0xff]  ;;  %v1584_v17 = vld [vmem:[%s359_s18 + $0x8] sm:$0xff]  ;;  %v1588_v19 = vld [vmem:[%s359_s18 + $0x18] sm:$0xff]  ;;  %s509_s20 = ssub.f32 0.0, %s373_s19  ;;  %s1749_s19 = scalar_lea.vmem %s1921_s5, %s1575_s12 }
  0x27   : > { %v1590_v20 = vld [vmem:[%s359_s18 + $0x20] sm:$0xff]  ;;  %v1592_v21 = vld [vmem:[%s359_s18 + $0x28] sm:$0xff]  ;;  %v399_v22 = vpack.c.bf16 %v1584_v17, %v1582_v16  ;;  %v400_v23 = vpack.c.bf16 %v1588_v19, %v1586_v18  ;;  %v1603_v25 = vld [vmem:[%s359_s18 + $0x30] sm:$0xff]  ;;  %v651_v36 = vstv %s1086_s21  ;;  %s338_s12 = sand.u32 1, %s1429_s28   ;;  %s881_s21 = scalar_lea.hbm %s1923_s7, %s1570_s25 }
  0x28   : > { %745 = vmatpush.bf16.msra.mxu1 %v1137_v2  ;;  %v401_v24 = vpack.c.bf16 %v1592_v21, %v1590_v20  ;;  %v1605_v26 = vld [vmem:[%s359_s18 + $0x38] sm:$0xff]  ;;  %v530_v31 = vstv %s509_s20  ;;  %v635_v33 = vld [vmem:[%s1619_s13] sm:$0xff]  ;;  %v637_v46 = vld [vmem:[%s1619_s13 + $0x10] sm:$0xff]  ;;  %s1788_s20 = sshll.u32 %s338_s12, 3  ;;  %s1830_s18 = sshll.u32 %s881_s21, 4  ;;  %s886_s18 = int_to_ptr.hbm [resolvable:$true] %s1830_s18 }
  0x29   : > { %v402_v27 = vpack.c.bf16 %v1605_v26, %v1603_v25  ;;  %v639_v49 = vld [vmem:[%s1619_s13 + $0x20] sm:$0xff]  ;;  %v636_v51 = vld [vmem:[%s1619_s13 + $0x8] sm:$0xff]  ;;  %v638_v1 = vld [vmem:[%s1619_s13 + $0x18] sm:$0xff]  ;;  %s340_s24 = scalar_lea.vmem [#allocation5], %s1788_s20  ;;  %s843_s10 = scalar_lea.sflag [#allocation3], %s338_s12 }
  0x2a   : > { %s1807_s26 = sshll.u32 %s340_s24, 4 }
  0x2b   : > { %1936 = sst [smem:[#allocation12_spill]] %s1807_s26 }
  0x2c   : > { %746 = vmatpush.bf16.msra.mxu1 %v1136_v4 }
  0x2d   : > { %481 = vmatpush.bf16.xpose.msra.mxu0 %v475_v3  ;;  %1141 = vmatpush.bf16.xpose.msra.mxu2 %v475_v3 }
  0x2e   : > { %1142 = vmatpush.bf16.xpose.msra.mxu3 %v475_v3  ;;  %v640_v3 = vld [vmem:[%s1619_s13 + $0x28] sm:$0xff] }
  0x30   : > { %747 = vmatpush.bf16.msra.mxu1 %v1135_v5 }
  0x34   : > { %748 = vmatpush.bf16.msra.mxu1 %v1134_v7 }
  0x35   : > { %482 = vmatpush.bf16.xpose.msra.mxu0 %v472_v6  ;;  %1143 = vmatpush.bf16.xpose.msra.mxu2 %v472_v6 }
  0x36   : > { %1144 = vmatpush.bf16.xpose.msra.mxu3 %v472_v6 }
  0x38   : > { %749 = vmatpush.bf16.msra.mxu1 %v1133_v8 }
  0x3c   : > { %750 = vmatpush.bf16.msra.mxu1 %v1132_v10 }
  0x3d   : > { %483 = vmatpush.bf16.xpose.msra.mxu0 %v469_v9  ;;  %1145 = vmatpush.bf16.xpose.msra.mxu2 %v469_v9 }
  0x3e   : > { %1146 = vmatpush.bf16.xpose.msra.mxu3 %v469_v9 }
  0x40   : > { %751 = vmatpush.bf16.msra.mxu1 %v1131_v11 }
  0x45   : > { %484 = vmatpush.bf16.xpose.msra.mxu0 %v466_v12  ;;  %1147 = vmatpush.bf16.xpose.msra.mxu2 %v466_v12 }
  0x46   : > { %1148 = vmatpush.bf16.xpose.msra.mxu3 %v466_v12  ;;  %v641_v12 = vld [vmem:[%s1619_s13 + $0x30] sm:$0xff] }
  0x4d   : > { %485 = vmatpush.bf16.xpose.msra.mxu0 %v463_v13  ;;  %1149 = vmatpush.bf16.xpose.msra.mxu2 %v463_v13 }
  0x4e   : > { %1150 = vmatpush.bf16.xpose.msra.mxu3 %v463_v13 }
  0x55   : > { %486 = vmatpush.bf16.xpose.msra.mxu0 %v460_v14  ;;  %1151 = vmatpush.bf16.xpose.msra.mxu2 %v460_v14 }
  0x56   : > { %1152 = vmatpush.bf16.xpose.msra.mxu3 %v460_v14 }
  0x5d   : > { %487 = vmatpush.bf16.xpose.msra.mxu0 %v457_v15  ;;  %1153 = vmatpush.bf16.xpose.msra.mxu2 %v457_v15 }
  0x5e   : > { %1154 = vmatpush.bf16.xpose.msra.mxu3 %v457_v15 }
  0x64   : > { %1119 = vmatmul.msk.bf16.vlgmr.msra.gmra.mxu0 %vm443_vm0, %v399_v22  ;;  %1120 = vmatmul.msk.bf16.vlgmr.msra.gmra.mxu2 %vm443_vm0, %v400_v23 }
  0x65   : > { %1121 = vmatmul.msk.bf16.vlgmr.msra.gmra.mxu3 %vm443_vm0, %v401_v24 }
  0x75   : > { %1122 = vmatmul.msk.bf16.gmra.mxu3 %vm443_vm0, %v402_v27  ;;  %v642_v27 = vld [vmem:[%s1619_s13 + $0x38] sm:$0xff]  ;;  %s1809_s13 = sshll.u32 %s867_s23, 4  ;;  %s1927_s23 = scalar_lea.vmem [#allocation6], %s1788_s20  ;;  %s872_s13 = int_to_ptr.hbm [resolvable:$true] %s1809_s13 }
  0x76   : > { %s1828_s17 = sshll.u32 %s1927_s23, 4  ;;  %s1325_s22 = sshra.s32 %s872_s13, 4  ;;  %s1326_s22 = int_to_ptr.hbm [resolvable:$true] %s1325_s22  ;;  %s884_s17 = int_to_ptr.vmem [resolvable:$true] %s1828_s17 }
  0x77   : > { %s1327_s26 = scalar_lea.hbm %s1326_s22, 8  ;;  %p1332_p3 = scmp.lt.s32.totalorder %s1326_s22, %s1922_s6 }
  0x78   : > { %p1328_p0 = scmp.ne.s32.totalorder %s1326_s22, %s1327_s26 }
  0x7a   : > { %p1329_p1 = pnand %p1328_p0, %p1525_p5 }
  0x7c   : > { %p1330_p2 = pneg %p1329_p1 }
  0xe1   : > { %v489_v29 = vpop.f32.mrf.mxu0 }
  0xe2   : > { %v511_v30 = vmul.f32 2.0, %v489_v29 }
  0xe4   : > { %v522_v32 = vsub.f32 %v1613_v28, %v511_v30 }
  0xe6   : > { %v1623_v34 = vmul.f32 %v530_v31, %v522_v32 }
  0xe7   : > { %v494_v35 = vpop.f32.mrf.mxu2 }
  0xe8   : > { %v513_v37 = vmul.f32 2.0, %v494_v35  ;;  %v499_v38 = vpop.f32.mrf.mxu3  ;;  %v643_v39 = vadd.f32 %v635_v33, %v1623_v34 }
  0xe9   : > { %v515_v40 = vmul.f32 2.0, %v499_v38  ;;  %v491_v41 = vpop.f32.mrf.mxu0 }
  0xea   : > { %v524_v42 = vsub.f32 %v1613_v28, %v513_v37  ;;  %v512_v43 = vmul.f32 2.0, %v491_v41  ;;  %v652_v44 = vmul.f32 %v651_v36, %v643_v39 }
  0xeb   : > { %v526_v45 = vsub.f32 %v1613_v28, %v515_v40 }
  0xec   : > { %v1629_v47 = vmul.f32 %v530_v31, %v524_v42  ;;  %v523_v48 = vsub.f32 %v1613_v28, %v512_v43  ;;  %660 = vmax.xlane.f32.xlu0 %v652_v44 }
  0xed   : > { %v1633_v50 = vmul.f32 %v530_v31, %v526_v45 }
  0xee   : > { %v1636_v52 = vmul.f32 %v530_v31, %v523_v48  ;;  %v645_v53 = vadd.f32 %v637_v46, %v1629_v47 }
  0xef   : > { %v496_v54 = vpop.f32.mrf.mxu2  ;;  %v647_v55 = vadd.f32 %v639_v49, %v1633_v50 }
  0xf0   : > { %v514_v56 = vmul.f32 2.0, %v496_v54  ;;  %v501_v57 = vpop.f32.mrf.mxu3  ;;  %v654_v58 = vmul.f32 %v651_v36, %v645_v53  ;;  %v644_v59 = vadd.f32 %v636_v51, %v1636_v52 }
  0xf1   : > { %v516_v60 = vmul.f32 2.0, %v501_v57  ;;  %v656_v61 = vmul.f32 %v651_v36, %v647_v55 }
  0xf2   : > { %v525_v62 = vsub.f32 %v1613_v28, %v514_v56  ;;  %664 = vmax.xlane.f32.xlu1 %v654_v58  ;;  %v653_v63 = vmul.f32 %v651_v36, %v644_v59 }
  0xf3   : > { %v527_v0 = vsub.f32 %v1613_v28, %v516_v60  ;;  %668 = vmax.xlane.f32.xlu2 %v656_v61 }
  0xf4   : > { %v1644_v2 = vmul.f32 %v530_v31, %v525_v62  ;;  %662 = vmax.xlane.f32.xlu0 %v653_v63 }
  0xf5   : > { %v1647_v4 = vmul.f32 %v530_v31, %v527_v0 }
  0xf6   : > { %v646_v5 = vadd.f32 %v638_v1, %v1644_v2 }
  0xf7   : > { %v648_v6 = vadd.f32 %v640_v3, %v1647_v4 }
  0xf8   : > { %v504_v7 = vpop.f32.mrf.mxu3  ;;  %v655_v8 = vmul.f32 %v651_v36, %v646_v5 }
  0xf9   : > { %v517_v9 = vmul.f32 2.0, %v504_v7  ;;  %v657_v10 = vmul.f32 %v651_v36, %v648_v6 }
  0xfa   : > { %666 = vmax.xlane.f32.xlu1 %v655_v8 }
  0xfb   : > { %v528_v11 = vsub.f32 %v1613_v28, %v517_v9  ;;  %670 = vmax.xlane.f32.xlu2 %v657_v10 }
  0xfd   : > { %v1653_v13 = vmul.f32 %v530_v31, %v528_v11 }
  0xff   : > { %v649_v14 = vadd.f32 %v641_v12, %v1653_v13 }
 0x100   : > { %v506_v15 = vpop.f32.mrf.mxu3 }
 0x101   : > { %v518_v22 = vmul.f32 2.0, %v506_v15  ;;  %v658_v23 = vmul.f32 %v651_v36, %v649_v14 }
 0x103   : > { %v529_v24 = vsub.f32 %v1613_v28, %v518_v22  ;;  %672 = vmax.xlane.f32.xlu0 %v658_v23 }
 0x105   : > { %v1658_v29 = vmul.f32 %v530_v31, %v529_v24 }
 0x107   : > { %v650_v30 = vadd.f32 %v642_v27, %v1658_v29 }
 0x109   : > { %v659_v32 = vmul.f32 %v651_v36, %v650_v30 }
 0x10b   : > { %674 = vmax.xlane.f32.xlu1 %v659_v32 }
 0x15f   : > { %v661_v33 = vpop.xlane.xlu0 %660 }
 0x160   : > { %v676_v35 = vsub.f32 %v652_v44, %v661_v33 }
 0x162   : > { %v684_v37 = vmul.f32 1.442695, %v676_v35 }
 0x164   : > { %1216 = vpow2.f32 %v684_v37 }
 0x165   : > { %v665_v38 = vpop.xlane.xlu1 %664 }
 0x166   : > { %v669_v39 = vpop.xlane.xlu2 %668  ;;  %v678_v40 = vsub.f32 %v654_v58, %v665_v38 }
 0x167   : > { %v663_v41 = vpop.xlane.xlu0 %662  ;;  %v680_v31 = vsub.f32 %v656_v61, %v669_v39 }
 0x168   : > { %v688_v42 = vmul.f32 1.442695, %v678_v40  ;;  %v677_v43 = vsub.f32 %v653_v63, %v663_v41 }
 0x169   : > { %v692_v44 = vmul.f32 1.442695, %v680_v31 }
 0x16a   : > { %v1217_v45 = vpop.eup %1216  ;;  %1218 = vpow2.f32 %v688_v42  ;;  %v686_v28 = vmul.f32 1.442695, %v677_v43 }
 0x16b   : > { %700 = vadd.xlane.f32.xlu2 %v1217_v45 }
 0x16c   : > { %1220 = vpow2.f32 %v686_v28 }
 0x16d   : > { %v667_v46 = vpop.xlane.xlu1 %666 }
 0x16e   : > { %v671_v48 = vpop.xlane.xlu2 %670  ;;  %v679_v36 = vsub.f32 %v655_v8, %v667_v46 }
 0x16f   : > { %v681_v49 = vsub.f32 %v657_v10, %v671_v48 }
 0x170   : > { %v1661_v51 = vpop.eup %1218  ;;  %v690_v53 = vmul.f32 1.442695, %v679_v36 }
 0x171   : > { %v694_v54 = vmul.f32 1.442695, %v681_v49  ;;  %704 = vadd.xlane.f32.xlu1 %v1661_v51 }
 0x172   : > { %v1221_v55 = vpop.eup %1220  ;;  %1222 = vpow2.f32 %v690_v53 }
 0x173   : > { %1224 = vpow2.f32 %v694_v54  ;;  %702 = vadd.xlane.f32.xlu0 %v1221_v55 }
 0x174   : > { %1226 = vpow2.f32 %v692_v44 }
 0x176   : > { %v673_v56 = vpop.xlane.xlu0 %672 }
 0x177   : > { %v682_v57 = vsub.f32 %v658_v23, %v673_v56 }
 0x178   : > { %v1223_v58 = vpop.eup %1222 }
 0x179   : > { %v1664_v59 = vpop.eup %1224  ;;  %v696_v60 = vmul.f32 1.442695, %v682_v57  ;;  %706 = vadd.xlane.f32.xlu2 %v1223_v58 }
 0x17a   : > { %v1666_v61 = vpop.eup %1226  ;;  %710 = vadd.xlane.f32.xlu1 %v1664_v59 }
 0x17b   : > { %1228 = vpow2.f32 %v696_v60  ;;  %708 = vadd.xlane.f32.xlu0 %v1666_v61 }
 0x17e   : > { %v675_v62 = vpop.xlane.xlu1 %674 }
 0x17f   : > { %v683_v63 = vsub.f32 %v659_v32, %v675_v62 }
 0x181   : > { %v1670_v0 = vpop.eup %1228  ;;  %v698_v1 = vmul.f32 1.442695, %v683_v63 }
 0x182   : > { %539 = vmax.xlane.f32.xlu1 %v1623_v34  ;;  %712 = vadd.xlane.f32.xlu2 %v1670_v0 }
 0x183   : > { %1230 = vpow2.f32 %v698_v1 }
 0x189   : > { %v1674_v3 = vpop.eup %1230 }
 0x18a   : > { %545 = vmax.xlane.f32.xlu1 %v1644_v2  ;;  %714 = vadd.xlane.f32.xlu0 %v1674_v3 }
 0x18b   : > { %541 = vmax.xlane.f32.xlu2 %v1636_v52 }
 0x192   : > { %551 = vmax.xlane.f32.xlu1 %v1653_v13  ;;  %543 = vmax.xlane.f32.xlu0 %v1629_v47 }
 0x193   : > { %547 = vmax.xlane.f32.xlu2 %v1633_v50 }
 0x19a   : > { %549 = vmax.xlane.f32.xlu0 %v1647_v4 }
 0x19b   : > { %553 = vmax.xlane.f32.xlu2 %v1658_v29 }
 0x1de   : > { %v701_v5 = vpop.xlane.xlu2 %700 }
 0x1df   : > { %1232 = vrcp.f32 %v701_v5 }
 0x1e4   : > { %v705_v6 = vpop.xlane.xlu1 %704 }
 0x1e5   : > { %v1233_v8 = vpop.eup %1232 }
 0x1e6   : > { %v703_v7 = vpop.xlane.xlu0 %702  ;;  %v724_v12 = vmul.f32 %v1233_v8, %v1217_v45 }
 0x1e7   : > { %1234 = vrcp.f32 %v703_v7 }
 0x1ec   : > { %v707_v9 = vpop.xlane.xlu2 %706 }
 0x1ed   : > { %v1235_v10 = vpop.eup %1234  ;;  %v711_v11 = vpop.xlane.xlu1 %710  ;;  %1236 = vrcp.f32 %v707_v9 }
 0x1ee   : > { %v725_v14 = vmul.f32 %v1235_v10, %v1221_v55  ;;  %v709_v22 = vpop.xlane.xlu0 %708  ;;  %1238 = vrcp.f32 %v705_v6 }
 0x1f0   : > { %v732_v15 = vpack.c.bf16 %v725_v14, %v724_v12 }
 0x1f2   : > { %752 = vmatmul.bf16.vlgmr.msra.gmra.mxu1 %v732_v15 }
 0x1f3   : > { %v1237_v32 = vpop.eup %1236 }
 0x1f4   : > { %v1239_v33 = vpop.eup %1238  ;;  %v727_v35 = vmul.f32 %v1237_v32, %v1223_v58 }
 0x1f5   : > { %v540_v23 = vpop.xlane.xlu1 %539  ;;  %v713_v24 = vpop.xlane.xlu2 %712  ;;  %v726_v41 = vmul.f32 %v1239_v33, %v1661_v51 }
 0x1f6   : > { %v1685_v27 = vsub.f32 %v1623_v34, %v540_v23 }
 0x1f7   : > { %v733_v45 = vpack.c.bf16 %v727_v35, %v726_v41 }
 0x1f8   : > { %v563_v30 = vmul.f32 1.442695, %v1685_v27 }
 0x1fa   : > { %1240 = vpow2.f32 %v563_v30 }
 0x1fb   : > { %1242 = vrcp.f32 %v709_v22 }
 0x1fd   : > { %v546_v37 = vpop.xlane.xlu1 %545  ;;  %v715_v38 = vpop.xlane.xlu0 %714 }
 0x1fe   : > { %v1689_v39 = vsub.f32 %v1644_v2, %v546_v37  ;;  %v542_v40 = vpop.xlane.xlu2 %541 }
 0x1ff   : > { %v1693_v42 = vsub.f32 %v1636_v52, %v542_v40 }
 0x200   : > { %v1695_v43 = vpop.eup %1240  ;;  %v569_v34 = vmul.f32 1.442695, %v1689_v39 }
 0x201   : > { %v565_v28 = vmul.f32 1.442695, %v1693_v42  ;;  %579 = vadd.xlane.f32.xlu0 %v1695_v43  ;;  %v1243_v36 = vpop.eup %1242 }
 0x202   : > { %1244 = vpow2.f32 %v569_v34  ;;  %757 = vmatmul.bf16.gmra.mxu1 %v733_v45 }
 0x203   : > { %1246 = vpow2.f32 %v565_v28 }
 0x204   : > { %1248 = vrcp.f32 %v711_v11 }
 0x205   : > { %v552_v2 = vpop.xlane.xlu1 %551  ;;  %v544_v31 = vpop.xlane.xlu0 %543 }
 0x206   : > { %v1701_v46 = vsub.f32 %v1653_v13, %v552_v2  ;;  %v548_v52 = vpop.xlane.xlu2 %547  ;;  %v1704_v48 = vsub.f32 %v1629_v47, %v544_v31 }
 0x207   : > { %v1707_v49 = vsub.f32 %v1633_v50, %v548_v52  ;;  %v728_v50 = vmul.f32 %v1243_v36, %v1666_v61 }
 0x208   : > { %v1709_v51 = vpop.eup %1244  ;;  %v575_v44 = vmul.f32 1.442695, %v1701_v46  ;;  %v567_v53 = vmul.f32 1.442695, %v1704_v48 }
 0x209   : > { %v1713_v54 = vpop.eup %1246  ;;  %v571_v55 = vmul.f32 1.442695, %v1707_v49  ;;  %585 = vadd.xlane.f32.xlu0 %v1709_v51 }
 0x20a   : > { %1250 = vpow2.f32 %v575_v44  ;;  %581 = vadd.xlane.f32.xlu1 %v1713_v54  ;;  %v1249_v47 = vpop.eup %1248 }
 0x20b   : > { %1252 = vpow2.f32 %v571_v55  ;;  %v729_v58 = vmul.f32 %v1249_v47, %v1664_v59 }
 0x20c   : > { %1254 = vpow2.f32 %v567_v53 }
 0x20d   : > { %v550_v13 = vpop.xlane.xlu0 %549  ;;  %v734_v1 = vpack.c.bf16 %v729_v58, %v728_v50  ;;  %1256 = vrcp.f32 %v715_v38 }
 0x20e   : > { %v554_v56 = vpop.xlane.xlu2 %553  ;;  %v1720_v57 = vsub.f32 %v1647_v4, %v550_v13 }
 0x20f   : > { %v1724_v60 = vsub.f32 %v1658_v29, %v554_v56 }
 0x210   : > { %v1726_v62 = vpop.eup %1250  ;;  %v573_v63 = vmul.f32 1.442695, %v1720_v57 }
 0x211   : > { %v1729_v5 = vpop.eup %1252  ;;  %v577_v61 = vmul.f32 1.442695, %v1724_v60  ;;  %591 = vadd.xlane.f32.xlu0 %v1726_v62 }
 0x212   : > { %v1733_v6 = vpop.eup %1254  ;;  %1258 = vpow2.f32 %v573_v63  ;;  %587 = vadd.xlane.f32.xlu1 %v1729_v5  ;;  %762 = vmatmul.bf16.gmra.mxu1 %v734_v1 }
 0x213   : > { %1260 = vpow2.f32 %v577_v61  ;;  %583 = vadd.xlane.f32.xlu2 %v1733_v6  ;;  %v1257_v4 = vpop.eup %1256 }
 0x214   : > { %1262 = vrcp.f32 %v713_v24  ;;  %v731_v8 = vmul.f32 %v1257_v4, %v1674_v3 }
 0x218   : > { %v1737_v29 = vpop.eup %1258 }
 0x219   : > { %v1739_v59 = vpop.eup %1260 }
 0x21a   : > { %593 = vadd.xlane.f32.xlu1 %v1739_v59  ;;  %v1263_v7 = vpop.eup %1262 }
 0x21b   : > { %589 = vadd.xlane.f32.xlu2 %v1737_v29  ;;  %v730_v9 = vmul.f32 %v1263_v7, %v1670_v0 }
 0x21d   : > { %v735_v10 = vpack.c.bf16 %v731_v8, %v730_v9 }
 0x222   : > { %767 = vmatmul.bf16.gmra.mxu1 %v735_v10 }
 0x26f   : > { %v1751_v11 = vpop.f32.mrf.mxu1 }
 0x270   : > { %773 = vst.msk [vmem:[%s1749_s19] sm:$0xff] %vm443_vm0, %v1751_v11 }
 0x274   : > { %v580_v12 = vpop.xlane.xlu0 %579 }
 0x277   : > { %v1756_v14 = vpop.f32.mrf.mxu1 }
 0x278   : > { %774 = vst.msk [vmem:[%s1749_s19 + $0x8] sm:$0xff] %vm443_vm0, %v1756_v14 }
 0x27c   : > { %v586_v15 = vpop.xlane.xlu0 %585 }
 0x27d   : > { %v582_v0 = vpop.xlane.xlu1 %581 }
 0x27e   : > { %1264 = vlog2.f32 %v582_v0 }
 0x27f   : > { %v1761_v3 = vpop.f32.mrf.mxu1  ;;  %1266 = vlog2.f32 %v580_v12 }
 0x280   : > { %775 = vst.msk [vmem:[%s1749_s19 + $0x10] sm:$0xff] %vm443_vm0, %v1761_v3  ;;  %1268 = vrcp.f32 %v582_v0 }
 0x281   : > { %1270 = vrcp.f32 %v580_v12 }
 0x282   : > { %1272 = vlog2.f32 %v586_v15 }
 0x283   : > { %1274 = vrcp.f32 %v586_v15 }
 0x284   : > { %v1265_v22 = vpop.eup %1264  ;;  %v592_v40 = vpop.xlane.xlu0 %591 }
 0x285   : > { %v588_v23 = vpop.xlane.xlu1 %587  ;;  %v1267_v24 = vpop.eup %1266  ;;  %v614_v35 = vmul.f32 0.6931472, %v1265_v22 }
 0x286   : > { %v584_v30 = vpop.xlane.xlu2 %583  ;;  %1276 = vlog2.f32 %v588_v23  ;;  %v1269_v33 = vpop.eup %1268  ;;  %v612_v37 = vmul.f32 0.6931472, %v1267_v24 }
 0x287   : > { %v1766_v32 = vpop.f32.mrf.mxu1  ;;  %1278 = vrcp.f32 %v584_v30  ;;  %v1271_v38 = vpop.eup %1270  ;;  %v604_v34 = vmul.f32 %v1269_v33, %v1713_v54  ;;  %v628_v28 = vsub.f32 %v1693_v42, %v614_v35  ;;  %v807_v33 = vsub.f32 %v1586_v18, %v1761_v3 }
 0x288   : > { %776 = vst.msk [vmem:[%s1749_s19 + $0x18] sm:$0xff] %vm443_vm0, %v1766_v32  ;;  %1280 = vlog2.f32 %v584_v30  ;;  %v1273_v41 = vpop.eup %1272  ;;  %v603_v31 = vmul.f32 %v1271_v38, %v1695_v43  ;;  %v627_v52 = vsub.f32 %v1685_v27, %v612_v37  ;;  %v805_v30 = vsub.f32 %v1582_v16, %v1751_v11 }
 0x289   : > { %v1275_v45 = vpop.eup %1274  ;;  %1282 = vrcp.f32 %v588_v23  ;;  %v618_v53 = vmul.f32 0.6931472, %v1273_v41  ;;  %v790_v42 = vmul.f32 %v628_v28, %v604_v34  ;;  %v808_v3 = vsub.f32 %v1588_v19, %v1766_v32 }
 0x28a   : > { %1284 = vlog2.f32 %v592_v40  ;;  %v781_v50 = vadd.f32 %v604_v34, %v603_v31  ;;  %v789_v43 = vmul.f32 %v627_v52, %v603_v31  ;;  %v606_v27 = vmul.f32 %v1275_v45, %v1709_v51 }
 0x28b   : > { %1286 = vrcp.f32 %v592_v40  ;;  %v630_v1 = vsub.f32 %v1689_v39, %v618_v53  ;;  %v806_v51 = vsub.f32 %v1584_v17, %v1756_v14  ;;  %v813_v34 = vmul.f32 %v805_v30, %v805_v30 }
 0x28c   : > { %v1277_v2 = vpop.eup %1276  ;;  %v797_v9 = vadd.f32 %v790_v42, %v789_v43  ;;  %v815_v45 = vmul.f32 %v807_v33, %v807_v33  ;;  %v816_v52 = vmul.f32 %v808_v3, %v808_v3 }
 0x28d   : > { %v594_v36 = vpop.xlane.xlu1 %593  ;;  %v1279_v44 = vpop.eup %1278  ;;  %v620_v61 = vmul.f32 0.6931472, %v1277_v2  ;;  %v792_v39 = vmul.f32 %v630_v1, %v606_v27  ;;  %v814_v40 = vmul.f32 %v806_v51, %v806_v51 }
 0x28e   : > { %v590_v55 = vpop.xlane.xlu2 %589  ;;  %v1281_v47 = vpop.eup %1280  ;;  %v605_v54 = vmul.f32 %v1279_v44, %v1733_v6  ;;  %1288 = vlog2.f32 %v594_v36  ;;  %v824_v44 = vsel %vm443_vm0, %v815_v45, 0.0 }
 0x28f   : > { %v763_v13 = vpop.f32.mrf.mxu1  ;;  %v616_v56 = vmul.f32 0.6931472, %v1281_v47  ;;  %1290 = vrcp.f32 %v590_v55  ;;  %v1283_v63 = vpop.eup %1282  ;;  %v822_v32 = vsel %vm443_vm0, %v814_v40, 0.0 }
 0x290   : > { %777 = vst.msk [vmem:[%s1749_s19 + $0x20] sm:$0xff] %vm443_vm0, %v763_v13  ;;  %v782_v58 = vadd.f32 %v781_v50, %v605_v54  ;;  %1292 = vlog2.f32 %v590_v55  ;;  %v1285_v6 = vpop.eup %1284  ;;  %v607_v0 = vmul.f32 %v1283_v63, %v1729_v5 }
 0x291   : > { %v629_v4 = vsub.f32 %v1704_v48, %v616_v56  ;;  %1294 = vrcp.f32 %v594_v36  ;;  %v1287_v8 = vpop.eup %1286  ;;  %v631_v48 = vsub.f32 %v1707_v49, %v620_v61  ;;  %v624_v23 = vmul.f32 0.6931472, %v1285_v6 }
 0x292   : > { %v783_v7 = vadd.f32 %v782_v58, %v606_v27  ;;  %v609_v16 = vmul.f32 %v1287_v8, %v1726_v62 }
 0x293   : > { %v791_v10 = vmul.f32 %v629_v4, %v605_v54  ;;  %v793_v18 = vmul.f32 %v631_v48, %v607_v0 }
 0x294   : > { %v1289_v12 = vpop.eup %1288  ;;  %v784_v14 = vadd.f32 %v783_v7, %v607_v0 }
 0x295   : > { %v1291_v15 = vpop.eup %1290  ;;  %v798_v22 = vadd.f32 %v797_v9, %v791_v10  ;;  %v626_v37 = vmul.f32 0.6931472, %v1289_v12 }
 0x296   : > { %v1293_v24 = vpop.eup %1292  ;;  %v608_v17 = vmul.f32 %v1291_v15, %v1737_v29  ;;  %v633_v29 = vsub.f32 %v1701_v46, %v624_v23 }
 0x297   : > { %v765_v5 = vpop.f32.mrf.mxu1  ;;  %v1295_v49 = vpop.eup %1294  ;;  %v799_v35 = vadd.f32 %v798_v22, %v792_v39  ;;  %v622_v38 = vmul.f32 0.6931472, %v1293_v24  ;;  %v634_v46 = vsub.f32 %v1724_v60, %v626_v37 }
 0x298   : > { %778 = vst.msk [vmem:[%s1749_s19 + $0x28] sm:$0xff] %vm443_vm0, %v765_v5  ;;  %v785_v11 = vadd.f32 %v784_v14, %v608_v17  ;;  %v610_v62 = vmul.f32 %v1295_v49, %v1739_v59  ;;  %v795_v59 = vmul.f32 %v633_v29, %v609_v16  ;;  %v810_v36 = vsub.f32 %v1592_v21, %v765_v5 }
 0x299   : > { %v632_v41 = vsub.f32 %v1720_v57, %v622_v38  ;;  %v800_v19 = vadd.f32 %v799_v35, %v793_v18  ;;  %v809_v57 = vsub.f32 %v1590_v20, %v763_v13  ;;  %v821_v20 = vsel %vm443_vm0, %v813_v34, 0.0 }
 0x29a   : > { %v786_v28 = vadd.f32 %v785_v11, %v609_v16  ;;  %v796_v55 = vmul.f32 %v634_v46, %v610_v62 }
 0x29b   : > { %v794_v2 = vmul.f32 %v632_v41, %v608_v17  ;;  %v817_v47 = vmul.f32 %v809_v57, %v809_v57 }
 0x29c   : > { %v787_v31 = vadd.f32 %v786_v28, %v610_v62 }
 0x29d   : > { %v801_v60 = vadd.f32 %v800_v19, %v794_v2 }
 0x29e   : > { %788 = vst [vmem:[%s340_s24] sm:$0xff] %v787_v31  ;;  %s1331_s24 = scalar_lea.hbm %s1922_s6, 16 }
 0x29f   : > { %v768_v53 = vpop.f32.mrf.mxu1  ;;  %v802_v50 = vadd.f32 %v801_v60, %v795_v59  ;;  %p1333_p4 = scmp.lt.s32.totalorder %s1331_s24, %s1327_s26 }
 0x2a0   : > { %779 = vst.msk [vmem:[%s1749_s19 + $0x30] sm:$0xff] %vm443_vm0, %v768_v53  ;;  %v811_v21 = vsub.f32 %v1603_v25, %v768_v53 }
 0x2a1   : > { %p1334_p7 = por %p1333_p4, %p1332_p3 }
 0x2a3   : > { %p1335_p8 = pnand %p1334_p7, %p1330_p2 }
 0x2a5   : > { %1338 = shalt.err (!%p1335_p8)
}
 0x2a6   : > { %s1937_s12 = sld [smem:[#allocation12_spill]]  ;;  %v823_v25 = vadd.f32 %v822_v32, %v821_v20  ;;  %v826_v54 = vsel %vm443_vm0, %v816_v52, 0.0  ;;  %v818_v13 = vmul.f32 %v810_v36, %v810_v36  ;;  %v803_v42 = vadd.f32 %v802_v50, %v796_v55  ;;  %s1939_s0 = scalar_lea.vmem [#allocation6], %s1788_s20 }
 0x2a7   : > { %v828_v43 = vsel %vm443_vm0, %v817_v47, 0.0  ;;  %v819_v27 = vmul.f32 %v811_v21, %v811_v21  ;;  %s1940_s1 = sand.u32 1, %s1506_s9   ;;  %s1353_s22 = sshra.s32 %s886_s18, 4  ;;  %s1354_s22 = int_to_ptr.hbm [resolvable:$true] %s1353_s22 }
 0x2a8   : > { %v825_v56 = vadd.f32 %v824_v44, %v823_v25  ;;  %804 = vst [vmem:[%s1939_s0] sm:$0xff] %v803_v42  ;;  %s1861_s26 = scalar_lea.sflag [#allocation7], %s1940_s1  ;;  %s1359_s23 = scalar_lea.hbm %s1923_s7, 16 }
 0x2a9   : > { %p1360_p12 = scmp.lt.s32.totalorder %s1354_s22, %s1923_s7 }
 0x2aa   : > { %v827_v58 = vadd.f32 %v826_v54, %v825_v56 }
 0x2ac   : > { %s1938_s2 = int_to_ptr.vmem [resolvable:$true] %s1937_s12 }
 0x2ad   : > { %1159 = dma.vmem_to_hbm [thread:$0]  (%p1525_p5), %s1938_s2, 128, %s872_s13, %s843_s10  }
 0x2ae   : > { %s1355_s2 = scalar_lea.hbm %s1354_s22, 8 }
 0x2af   : > { %p1356_p9 = scmp.ne.s32.totalorder %s1354_s22, %s1355_s2  ;;  %p1361_p13 = scmp.lt.s32.totalorder %s1359_s23, %s1355_s2 }
 0x2b1   : > { %p1357_p10 = pnand %p1356_p9, %p1525_p5  ;;  %p1362_p0 = por %p1361_p13, %p1360_p12 }
 0x2b3   : > { %p1358_p11 = pneg %p1357_p10 }
 0x2b5   : > { %p1363_p1 = pnand %p1362_p0, %p1358_p11 }
 0x2b7   : > { %1366 = shalt.err (!%p1363_p1)
}
 0x2b8   : > { %1160 = dma.vmem_to_hbm [thread:$0]  (%p1525_p5), %s884_s17, 128, %s886_s18, %s1861_s26   ;;  %v830_v63 = vsel %vm443_vm0, %v818_v13, 0.0  ;;  %v829_v1 = vadd.f32 %v828_v43, %v827_v58  ;;  %v770_v61 = vpop.f32.mrf.mxu1  ;;  %v832_v4 = vsel %vm443_vm0, %v819_v27, 0.0 }
 0x2b9   : > { %s895_s0 = scalar_lea.hbm %s1924_s8, %s1570_s25  ;;  %780 = vst.msk [vmem:[%s1749_s19 + $0x38] sm:$0xff] %vm443_vm0, %v770_v61  ;;  %v812_v6 = vsub.f32 %v1605_v26, %v770_v61  ;;  %s354_s1 = scalar_lea.vmem [#allocation8], %s1788_s20 }
 0x2ba   : > { %v831_v7 = vadd.f32 %v830_v63, %v829_v1  ;;  %s897_s22 = sshll.u32 %s354_s1, 4  ;;  %s899_s17 = sshll.u32 %s895_s0, 4  ;;  %s898_s22 = int_to_ptr.vmem [resolvable:$true] %s897_s22  ;;  %s900_s17 = int_to_ptr.hbm [resolvable:$true] %s899_s17 }
 0x2bb   : > { %v820_v8 = vmul.f32 %v812_v6, %v812_v6  ;;  %s1381_s25 = sshra.s32 %s900_s17, 4  ;;  %s1387_s20 = scalar_lea.hbm %s1924_s8, 16  ;;  %s1382_s25 = int_to_ptr.hbm [resolvable:$true] %s1381_s25 }
 0x2bc   : > { %v833_v9 = vadd.f32 %v832_v4, %v831_v7  ;;  %s1383_s18 = scalar_lea.hbm %s1382_s25, 8  ;;  %p1388_p7 = scmp.lt.s32.totalorder %s1382_s25, %s1924_s8 }
 0x2bd   : > { %v834_v10 = vsel %vm443_vm0, %v820_v8, 0.0  ;;  %p1384_p2 = scmp.ne.s32.totalorder %s1382_s25, %s1383_s18  ;;  %p1389_p8 = scmp.lt.s32.totalorder %s1387_s20, %s1383_s18 }
 0x2be   : > { %v835_v12 = vadd.f32 %v834_v10, %v833_v9 }
 0x2bf   : > { %p1385_p3 = pnand %p1384_p2, %p1525_p5  ;;  %p1390_p9 = por %p1389_p8, %p1388_p7 }
 0x2c0   : > { %836 = vst.msk [vmem:[%s354_s1] sm:$0xff] %vm443_vm0, %v835_v12 }
 0x2c1   : > { %p1386_p4 = pneg %p1385_p3 }
 0x2c3   : > { %p1391_p10 = pnand %p1390_p9, %p1386_p4 }
 0x2c5   : > { %1394 = shalt.err (!%p1391_p10)
}
 0x2c6   : > { %1161 = dma.vmem_to_hbm [thread:$0]  (%p1525_p5), %s898_s22, 128, %s900_s17, %s1861_s26  }
 0x2c7 PF: > { %p1181_p11 = scmp.ge.s32.totalorder %s1437_s30, 2  ;;  %s919_s23 = sand.u32 1, %s1425_s27  }
 0x2c8   : > { %s920_s21 = scalar_lea.sflag [#allocation3], %s919_s23 }
 0x2c9   : > { %p1170_p12 = pnand %p1181_p11, %p1529_p6 }
 0x2cb   : > { %p1171_p13 = pneg %p1170_p12 }
 0x2cd   : > { %1416 = dma.done.wait (%p1171_p13), %s920_s21, 128  }
 0x2ce   : > { %1418 = vsyncadd (%p1171_p13), %s920_s21, 4294967168  ;;  %s1941_s24 = sadd.s32 4294967294, %s1437_s30  }
 0x2cf   : > { %s929_s9 = sand.u32 1, %s1941_s24  }
 0x2d0   : > { %s930_s12 = scalar_lea.sflag [#allocation7], %s929_s9 }
 0x2d1   : > { %1420 = dma.done.wait (%p1171_p13), %s930_s12, 256  }
 0x2d2   : > { %1422 = vsyncadd (%p1171_p13), %s930_s12, 4294967040  ;;  %p23_p5 = scmp.ge.s32.totalorder %s1510_s11, 4   ;;  %s1942_s27 = smov %s1429_s28 }
 0x2d3   : > { %s1943_s28 = smov %s1433_s29  ;;  %s1944_s29 = smov %s1523_s14 }
 0x2d4   : > { %s1945_s30 = smov %s1510_s11  ;;  %25 = sbr.rel (!%p23_p5) target bundleno = 10 (0xa), region = 127 }
 0x2d9   :  { %946 = vsyncpa [#allocation3], 1 }
 0x2da   :  { %948 = vsyncpa [#allocation3 + $0x1], 1 }
 0x2db   :  { %949 = vsyncpa [#allocation7], 1 }
 0x2dc   :  { %951 = vsyncpa [#allocation7 + $0x1], 1 }
 0x2dd   :  { %952 = vsyncpa [#allocation4], 1 }
 0x2de   :  { %954 = vsyncpa [#allocation4 + $0x1], 1 }

</bundles_post_ra>
